<compile_context>
chip_gen: v7x
topology: tpu7x:2x2x1
jax: 0.10.0
libtpu: 0.0.40
codegen_flags: <defaults>
</compile_context>

<pallas_src>
import jax
import jax.numpy as jnp
from jax.experimental import pallas as pl
from jax.experimental.pallas import tpu as pltpu

# Fixed padded tile: one full f32 vreg (8 sublanes x 128 lanes).
_PAD_SUBLANES = 8
_PAD_LANES = 128
_PADDED = _PAD_SUBLANES * _PAD_LANES  # 1024 >= any n <= 10


def _needs_bf16_upcast() -> bool:
    """True on generations without a native bf16 VALU path (v5e and older)."""
    try:
        kind = jax.devices()[0].device_kind.lower()
    except Exception:
        return True  # conservative fallback: compute bf16 in f32
    return any(tag in kind for tag in ("v2", "v3", "v4", "v5"))


_UPCAST_BF16 = _needs_bf16_upcast()


def _dynshape_kernel(x_ref, o_ref):
    x = x_ref[...]
    orig_dtype = x.dtype
    if orig_dtype == jnp.bfloat16 and _UPCAST_BF16:
        # v5e-only: no bf16 VALU, compute in f32 and cast back on store.
        x = x.astype(jnp.float32)
    # Unrolled hot loop: x = (2x)^2, four times (== 2**30 * x**16 overall).
    for _ in range(4):
        x = x + x
        x = x * x
    o_ref[...] = x.astype(orig_dtype)


@jax.jit
def _forward_padded(x2d: jax.Array) -> jax.Array:
    """Runs the elementwise chain on a fixed (8, 128) tile.

    Whole-array BlockSpec, no grid: the tile lives in VMEM as one block, so
    there is no pipeline prologue/epilogue and the load/store is unmasked.
    """
    return pl.pallas_call(
        _dynshape_kernel,
        out_shape=jax.ShapeDtypeStruct(x2d.shape, x2d.dtype),
        in_specs=[pl.BlockSpec(memory_space=pltpu.MemorySpace.VMEM)],
        out_specs=pl.BlockSpec(memory_space=pltpu.MemorySpace.VMEM),
    )(x2d)


def module_input_dynamic_shape(x: jax.Array) -> jax.Array:
    """Applies the ModuleInputDynamicShape forward pass to a 1-D array."""
    assert x.ndim == 1
    n = x.shape[0]
    assert n <= _PADDED, f"length {n} exceeds static bucket {_PADDED}"
    # Bucket every dynamic length into one static (8, 128) tile so the Pallas
    # executable compiles exactly once; the tiny pad/slice around it is cheap
    # eager work.  Zero-padding is safe: the op chain maps 0 -> 0 and padded
    # lanes are discarded by the [:n] slice anyway.
    x_padded = jnp.pad(x, (0, _PADDED - n))
    out = _forward_padded(x_padded.reshape(_PAD_SUBLANES, _PAD_LANES))
    return out.reshape(_PADDED)[:n]


def _reference(x: jnp.ndarray) -> jnp.ndarray:
    for _ in range(4):
        x = x + x
        x = x * x
    return x


if __name__ == "__main__":
    key = jax.random.PRNGKey(0)
    # Dynamic-shape module: upper bound is length 10; exercise a few sizes.
    for n in (1, 3, 8, 10):
        key, sub = jax.random.split(key)
        x = jax.random.normal(sub, (n,), dtype=jnp.float32)

        out = module_input_dynamic_shape(x)
        out = jax.block_until_ready(out)

        ref = _reference(x)
        assert out.shape == ref.shape, (out.shape, ref.shape)
        assert jnp.allclose(out, ref, rtol=1e-5, atol=1e-5), (n, out, ref)

    print("KERNEL_OK")
</pallas_src>

<mosaic_0001>
module attributes {stable_mosaic.version = 11 : i64} {
  func.func @_dynshape_kernel(%arg0: memref<8x128xf32, #tpu.memory_space<vmem>>, %arg1: memref<8x128xf32, #tpu.memory_space<vmem>>) attributes {dimension_semantics = [], scalar_prefetch = 0 : i64, scratch_operands = 0 : i64, tpu.core_type = #tpu.core_type<tc>} {
    %c0 = arith.constant 0 : index
    %c0_0 = arith.constant 0 : index
    %0 = vector.load %arg0[%c0, %c0_0] : memref<8x128xf32, #tpu.memory_space<vmem>>, vector<8x128xf32>
    %1 = arith.addf %0, %0 : vector<8x128xf32>
    %2 = arith.mulf %1, %1 : vector<8x128xf32>
    %3 = arith.addf %2, %2 : vector<8x128xf32>
    %4 = arith.mulf %3, %3 : vector<8x128xf32>
    %5 = arith.addf %4, %4 : vector<8x128xf32>
    %6 = arith.mulf %5, %5 : vector<8x128xf32>
    %7 = arith.addf %6, %6 : vector<8x128xf32>
    %8 = arith.mulf %7, %7 : vector<8x128xf32>
    %c0_1 = arith.constant 0 : index
    %c0_2 = arith.constant 0 : index
    %9 = vector.load %arg1[%c0_1, %c0_2] : memref<8x128xf32, #tpu.memory_space<vmem>>, vector<8x128xf32>
    tpu.vector_store %arg1[%c0_1, %c0_2], %8 {strides = array<i32>} : memref<8x128xf32, #tpu.memory_space<vmem>>, vector<8x128xf32>,
    return
  }
}

</mosaic_0001>

<bundles_post_ra>
// kernel: _forward_padded.1
= control target key start
LH: loop header
LB: loop body
LE: loop exit
PB: predicated region body
PF: predicated region fallthrough
CT: control target
= control target key end

     0   :  { %6 = vsyncpa [#allocation3], 0  ;;  %s132_s0 = inlined_call_operand.hbm [shape: f32[8,128], index: 0, kind: input, shape index: {}]   ;;  %s133_s1 = inlined_call_operand.hbm [shape: f32[8,128], index: 1, kind: output, shape index: {}]  }
   0x1   :  { %7 = vsyncpa [#allocation4], 0  ;;  %s96_s6 = smov [#allocation2]   ;;  %s48_s10 = scalar_lea.hbm %s132_s0, 128 }
   0x2   :  { %s14_s7 = sshll.u32 %s96_s6, 4  ;;  %p49_p0 = scmp.ne.s32.totalorder %s132_s0, %s48_s10  ;;  %s15_s7 = int_to_ptr.vmem [resolvable:$true] %s14_s7 }
   0x3   :  { %p52_p1 = scmp.lt.u32.totalorder %s48_s10, %s132_s0 }
   0x5   :  { %p54_p2 = pnand %p52_p1, %p49_p0 }
   0x7   :  { %57 = shalt.err (!%p54_p2)
}
   0x8   :  { %s58_s15 = scalar_lea.vmem %s15_s7, 128  ;;  %p63_p4 = scmp.lt.s32.totalorder %s15_s7, %s15_s7 }
   0x9   :  { %p59_p3 = scmp.ne.s32.totalorder %s15_s7, %s58_s15  ;;  %p64_p5 = scmp.lt.s32.totalorder %s58_s15, %s58_s15 }
   0xb   :  { %p65_p6 = por %p64_p5, %p63_p4 }
   0xd   :  { %p66_p7 = pnand %p65_p6, %p59_p3 }
   0xf   :  { %69 = shalt.err (!%p66_p7)
}
  0x10   :  { %17 = dma.hbm_to_vmem [thread:$0]  %s132_s0, 128, %s15_s7, [#allocation3]  }
  0x11   :  { %92 = dma.done.wait [#allocation3], 128  }
  0x12   :  { %93 = vsyncadd [#allocation3], 4294967168  ;;  %v21_v0 = vld [vmem:[#allocation2] sm:$0xff]  ;;  %s97_s18 = smov [#allocation5]  }
  0x13   :  { %v22_v1 = vadd.f32 %v21_v0, %v21_v0  ;;  %s37_s19 = sshll.u32 %s97_s18, 4  ;;  %s38_s19 = int_to_ptr.vmem [resolvable:$true] %s37_s19 }
  0x14   :  { %s70_s20 = scalar_lea.vmem %s38_s19, 128  ;;  %p75_p9 = scmp.lt.s32.totalorder %s38_s19, %s38_s19 }
  0x15   :  { %v23_v2 = vmul.f32 %v22_v1, %v22_v1  ;;  %p71_p8 = scmp.ne.s32.totalorder %s38_s19, %s70_s20  ;;  %p76_p10 = scmp.lt.s32.totalorder %s70_s20, %s70_s20 }
  0x17   :  { %v24_v3 = vadd.f32 %v23_v2, %v23_v2  ;;  %p77_p11 = por %p76_p10, %p75_p9 }
  0x19   :  { %v25_v4 = vmul.f32 %v24_v3, %v24_v3  ;;  %p78_p12 = pnand %p77_p11, %p71_p8 }
  0x1b   :  { %v26_v5 = vadd.f32 %v25_v4, %v25_v4 }
  0x1d   :  { %v27_v6 = vmul.f32 %v26_v5, %v26_v5 }
  0x1f   :  { %v28_v7 = vadd.f32 %v27_v6, %v27_v6 }
  0x21   :  { %v29_v8 = vmul.f32 %v28_v7, %v28_v7 }
  0x23   :  { %30 = vst [vmem:[#allocation5] sm:$0xff] %v29_v8 }
  0x24   :  { %81 = shalt.err (!%p78_p12)
}
  0x25   :  { %s82_s22 = scalar_lea.hbm %s133_s1, 128 }
  0x26   :  { %p83_p13 = scmp.ne.s32.totalorder %s133_s1, %s82_s22  ;;  %p86_p0 = scmp.lt.u32.totalorder %s82_s22, %s133_s1 }
  0x28   :  { %p88_p1 = pnand %p86_p0, %p83_p13 }
  0x2a   :  { %91 = shalt.err (!%p88_p1)
}
  0x2b   :  { %40 = dma.vmem_to_hbm [thread:$0]  %s38_s19, 128, %s133_s1, [#allocation4]  }
  0x2c   :  { %94 = dma.done.wait [#allocation4], 128  }
  0x2d   :  { %95 = vsyncadd [#allocation4], 4294967168 }
  0x2e   :  { %44 = vsyncpa [#allocation3], 1 }
  0x2f   :  { %45 = vsyncpa [#allocation4], 1 }

</bundles_post_ra>
